<compile_context>
chip_gen: v7x
topology: tpu7x:2x2x1
jax: 0.10.0
libtpu: 0.0.40
codegen_flags: <defaults>
</compile_context>

<pallas_src>
import random as pyrandom
from functools import lru_cache, partial

import numpy as np
import jax
import jax.numpy as jnp
from jax.experimental import pallas as pl
from jax.experimental.pallas import tpu as pltpu


# ----------------------------------------------------------------------------
# Shared helpers.
# ----------------------------------------------------------------------------
_MAX_BLOCK_BYTES = 2 * 1024 * 1024  # per-step block cap (keeps 2x-in + 2x-out
                                    # double buffering well under v7x VMEM)


@lru_cache(maxsize=None)
def _rev_eye_np(n):
    # Anti-identity (symmetric): R @ X reverses rows, X @ R reverses columns.
    return np.eye(n, dtype=np.float32)[::-1].copy()


def _sublane_tile(dtype):
    # Sub-32-bit dtypes pack along sublanes: 8 (4B), 16 (2B), 32 (1B).
    return max(8, 32 // jnp.dtype(dtype).itemsize)


def _dot_precision(dtype):
    # bf16 inputs survive a single MXU pass exactly (0/1 weights, bf16 acts).
    # Everything else is computed in f32 and needs HIGHEST so the permutation
    # matmul is bit-exact (see header comment).
    if jnp.dtype(dtype) == jnp.bfloat16:
        return jax.lax.Precision.DEFAULT
    return jax.lax.Precision.HIGHEST


def _pick_h_block(h, row_bytes, tile):
    """Largest divisor of h that is a multiple of `tile`, <= 128, and keeps the
    per-step block under _MAX_BLOCK_BYTES.  Falls back to the full dim (always
    a legal block shape) when no aligned divisor exists."""
    cands = [s for s in range(tile, min(h, 128) + 1, tile) if h % s == 0]
    fits = [s for s in cands if s * row_bytes <= _MAX_BLOCK_BYTES]
    if fits:
        return max(fits)
    if cands:
        return min(cands)
    return h


# ----------------------------------------------------------------------------
# Vertical flip (reverse along H).
# Block order along H is reversed by the index_map; rows inside the block are
# reversed by an exact (SH x SH) 0/1 anti-identity left-multiply per channel.
# ----------------------------------------------------------------------------
def _vflip_kernel(x_ref, r_ref, o_ref, *, c, precision):
    rmat = r_ref[...]                                   # (SH, SH), 0/1, f32
    for ci in range(c):                                 # static unroll, C small
        xx = x_ref[0, ci].astype(jnp.float32)           # (SH, W)
        out = jnp.dot(rmat, xx, precision=precision,
                      preferred_element_type=jnp.float32)
        o_ref[0, ci] = out.astype(o_ref.dtype)


def _vflip_impl(x):
    b, c, h, w = x.shape
    sh = _pick_h_block(h, c * w * 4, _sublane_tile(x.dtype))
    nh = h // sh
    rmat = jnp.asarray(_rev_eye_np(sh))                 # trace-time constant
    prec = _dot_precision(x.dtype)
    return pl.pallas_call(
        partial(_vflip_kernel, c=c, precision=prec),
        out_shape=jax.ShapeDtypeStruct((b, c, h, w), x.dtype),
        grid_spec=pltpu.PrefetchScalarGridSpec(
            num_scalar_prefetch=0,
            grid=(b, nh),
            in_specs=[
                # reversed block order along H
                pl.BlockSpec((1, c, sh, w), lambda bi, i: (bi, 0, nh - 1 - i, 0)),
                # same block every step -> fetched once, stays VMEM-resident
                pl.BlockSpec((sh, sh), lambda bi, i: (0, 0)),
            ],
            out_specs=pl.BlockSpec((1, c, sh, w), lambda bi, i: (bi, 0, i, 0)),
        ),
        compiler_params=pltpu.CompilerParams(
            dimension_semantics=("parallel", "parallel")),
    )(x, rmat)


# ----------------------------------------------------------------------------
# Horizontal flip (reverse along W): one exact 0/1 permutation matmul for the
# whole (C*SH, W) slab (lane reversal has no data-movement primitive here).
# ----------------------------------------------------------------------------
def _hflip_kernel(x_ref, j_ref, o_ref, *, c, sh, w, merge, precision):
    jmat = j_ref[...]                                   # (W, W), 0/1, f32
    if merge:
        xx = x_ref[0].astype(jnp.float32).reshape(c * sh, w)
        out = jnp.dot(xx, jmat, precision=precision,
                      preferred_element_type=jnp.float32)
        o_ref[0] = out.reshape(c, sh, w).astype(o_ref.dtype)
    else:
        for ci in range(c):
            xx = x_ref[0, ci].astype(jnp.float32)
            out = jnp.dot(xx, jmat, precision=precision,
                          preferred_element_type=jnp.float32)
            o_ref[0, ci] = out.astype(o_ref.dtype)


def _hflip_impl(x):
    b, c, h, w = x.shape
    sh = _pick_h_block(h, c * w * 4, _sublane_tile(x.dtype))
    nh = h // sh
    jmat = jnp.asarray(_rev_eye_np(w))                  # trace-time constant
    prec = _dot_precision(x.dtype)
    merge = (sh % 8 == 0)  # (C,SH,W)->(C*SH,W) reshape is layout-free (f32)
    return pl.pallas_call(
        partial(_hflip_kernel, c=c, sh=sh, w=w, merge=merge, precision=prec),
        out_shape=jax.ShapeDtypeStruct((b, c, h, w), x.dtype),
        grid_spec=pltpu.PrefetchScalarGridSpec(
            num_scalar_prefetch=0,
            grid=(b, nh),
            in_specs=[
                pl.BlockSpec((1, c, sh, w), lambda bi, i: (bi, 0, i, 0)),
                pl.BlockSpec((w, w), lambda bi, i: (0, 0)),
            ],
            out_specs=pl.BlockSpec((1, c, sh, w), lambda bi, i: (bi, 0, i, 0)),
        ),
        compiler_params=pltpu.CompilerParams(
            dimension_semantics=("parallel", "parallel")),
    )(x, jmat)


@jax.jit
def vflip_pallas(x):
    if x.dtype == jnp.bool_:
        return _vflip_impl(x.astype(jnp.int32)).astype(jnp.bool_)
    return _vflip_impl(x)


@jax.jit
def hflip_pallas(x):
    if x.dtype == jnp.bool_:
        return _hflip_impl(x.astype(jnp.int32)).astype(jnp.bool_)
    return _hflip_impl(x)


# ----------------------------------------------------------------------------
# Module-faithful forward.
# ----------------------------------------------------------------------------
class Flip:
    """Pallas port of the PyTorch `Flip` module (random h/v flip)."""

    def __init__(self, rng=None):
        self._rng = rng if rng is not None else pyrandom.Random()

    def __call__(self, input_tensor, other_tensor=None):
        k = self._rng.random()
        flip_fn = hflip_pallas if k >= 0.5 else vflip_pallas
        out = flip_fn(input_tensor)
        if other_tensor is not None:
            if isinstance(other_tensor, list):
                other_out = [flip_fn(t) for t in other_tensor]
            else:
                other_out = flip_fn(other_tensor)
            return out, other_out
        return out


if __name__ == "__main__":
    key = jax.random.PRNGKey(0)
    k1, k2, k3 = jax.random.split(key, 3)
    x = jax.random.normal(k1, (2, 4, 16, 16), dtype=jnp.float32)
    other = jax.random.normal(k2, (2, 4, 16, 16), dtype=jnp.float32)

    # Module-faithful forward: deterministically-seeded host-side flip choice,
    # same transform applied to the paired tensor.
    flip = Flip(rng=pyrandom.Random(0))
    y, y_other = flip(x, other)
    jax.block_until_ready((y, y_other))

    # Both flip paths must be bit-exact against jnp references (flips are
    # lossless transforms).
    out_v = vflip_pallas(x)
    out_h = hflip_pallas(x)
    jax.block_until_ready((out_v, out_h))
    np.testing.assert_array_equal(np.asarray(out_v),
                                  np.asarray(jnp.flip(x, axis=-2)))
    np.testing.assert_array_equal(np.asarray(out_h),
                                  np.asarray(jnp.flip(x, axis=-1)))

    # Segmentation-mask style integer labels must survive exactly as well.
    seg = jax.random.randint(k3, (2, 4, 16, 16), 0, 5, dtype=jnp.int32)
    np.testing.assert_array_equal(np.asarray(vflip_pallas(seg)),
                                  np.asarray(jnp.flip(seg, axis=-2)))
    np.testing.assert_array_equal(np.asarray(hflip_pallas(seg)),
                                  np.asarray(jnp.flip(seg, axis=-1)))

    print("KERNEL_OK")
</pallas_src>

<mosaic_0001>
module attributes {stable_mosaic.version = 11 : i64} {
  func.func @_hflip_kernel(%arg0: i32, %arg1: i32, %arg2: memref<1x4x16x16xf32, #tpu.memory_space<vmem>>, %arg3: memref<16x16xf32, #tpu.memory_space<vmem>>, %arg4: memref<1x4x16x16xf32, #tpu.memory_space<vmem>>) attributes {dimension_semantics = [#tpu.dimension_semantics<parallel>, #tpu.dimension_semantics<parallel>], iteration_bounds = array<i64: 2, 1>, scalar_prefetch = 0 : i64, scratch_operands = 0 : i64, tpu.core_type = #tpu.core_type<tc>, window_params = [{transform_indices = @transform_0, window_bounds = array<i64: 1, 4, 16, 16>}, {pipeline_mode = #tpu.pipeline_mode<synchronous>, transform_indices = @transform_1, window_bounds = array<i64: 16, 16>}, {transform_indices = @transform_2, window_bounds = array<i64: 1, 4, 16, 16>}]} {
    %c0 = arith.constant 0 : index
    %c0_0 = arith.constant 0 : index
    %0 = vector.load %arg3[%c0, %c0_0] : memref<16x16xf32, #tpu.memory_space<vmem>>, vector<16x16xf32>
    %c0_1 = arith.constant 0 : index
    %c0_2 = arith.constant 0 : index
    %c0_3 = arith.constant 0 : index
    %c0_4 = arith.constant 0 : index
    %1 = vector.load %arg2[%c0_1, %c0_2, %c0_3, %c0_4] : memref<1x4x16x16xf32, #tpu.memory_space<vmem>>, vector<1x4x16x16xf32>
    %2 = vector.shape_cast %1 : vector<1x4x16x16xf32> to vector<4x16x16xf32>
    %3 = vector.shape_cast %2 : vector<4x16x16xf32> to vector<64x16xf32>
    %cst = arith.constant dense<0.000000e+00> : vector<64x16xf32>
    %4 = tpu.matmul %3, %0, %cst {dimension_numbers = #tpu.dot_dimension_numbers<[1], [0], [0], [1], [0, 0, 1, 1], [], []>, precision = #tpu.contract_precision<fp32>} : vector<64x16xf32>, vector<16x16xf32>, vector<64x16xf32> -> vector<64x16xf32>
    %5 = vector.shape_cast %4 : vector<64x16xf32> to vector<4x16x16xf32>
    %c0_5 = arith.constant 0 : index
    %c0_6 = arith.constant 0 : index
    %c0_7 = arith.constant 0 : index
    %c0_8 = arith.constant 0 : index
    %6 = vector.load %arg4[%c0_5, %c0_6, %c0_7, %c0_8] : memref<1x4x16x16xf32, #tpu.memory_space<vmem>>, vector<1x4x16x16xf32>
    %7 = vector.shape_cast %6 : vector<1x4x16x16xf32> to vector<4x16x16xf32>
    %8 = vector.shape_cast %5 : vector<4x16x16xf32> to vector<1x4x16x16xf32>
    tpu.vector_store %arg4[%c0_5, %c0_6, %c0_7, %c0_8], %8 {strides = array<i32>} : memref<1x4x16x16xf32, #tpu.memory_space<vmem>>, vector<1x4x16x16xf32>,
    return
  }
  func.func @transform_0(%arg0: i32, %arg1: i32) -> (i32, i32, i32, i32) {
    %c0_i32 = arith.constant 0 : i32
    %c0_i32_0 = arith.constant 0 : i32
    %c0_i32_1 = arith.constant 0 : i32
    return %arg0, %c0_i32, %arg1, %c0_i32_0 : i32, i32, i32, i32
  }
  func.func @transform_1(%arg0: i32, %arg1: i32) -> (i32, i32) {
    %c0_i32 = arith.constant 0 : i32
    %c0_i32_0 = arith.constant 0 : i32
    %c0_i32_1 = arith.constant 0 : i32
    return %c0_i32, %c0_i32_0 : i32, i32
  }
  func.func @transform_2(%arg0: i32, %arg1: i32) -> (i32, i32, i32, i32) {
    %c0_i32 = arith.constant 0 : i32
    %c0_i32_0 = arith.constant 0 : i32
    %c0_i32_1 = arith.constant 0 : i32
    return %arg0, %c0_i32, %arg1, %c0_i32_0 : i32, i32, i32, i32
  }
}

</mosaic_0001>

<bundles_post_ra>
// kernel: hflip_pallas.1
= control target key start
LH: loop header
LB: loop body
LE: loop exit
PB: predicated region body
PF: predicated region fallthrough
CT: control target
= control target key end

     0   :  { %7 = vsyncpa [#allocation3], 0  ;;  %s1926_s0 = inlined_call_operand.hbm [shape: f32[2,4,16,16], index: 0, kind: input, shape index: {}]   ;;  %s1927_s1 = inlined_call_operand.hbm [shape: f32[16,16], index: 1, kind: input, shape index: {}]   ;;  %s1928_s2 = inlined_call_operand.hbm [shape: f32[2,4,16,16], index: 2, kind: output, shape index: {}]  }
   0x1   :  { %9 = vsyncpa [#allocation3 + $0x1], 0 }
   0x2   :  { %10 = vsyncpa [#allocation6], 0 }
   0x3   :  { %11 = vsyncpa [#allocation4], 0 }
   0x4   :  { %13 = vsyncpa [#allocation4 + $0x1], 0  ;;  %s1597_s9 = smov 0   ;;  %s1599_s10 = smov 0  }
   0x5   :  { %s1601_s11 = smov 0   ;;  %s1603_s12 = smov 0  }
   0x6   :  { %s1605_s13 = smov 0   ;;  %s1607_s14 = smov 0  }
   0x7 LB: > { %s1113_s15 = sadd.s32 4294967295, %s1573_s14   ;;  %s1114_s16 = sadd.s32 4294967294, %s1573_s14   ;;  %s1573_s14 = sphi %s1607_s14, %s19_s14   ;;  %s1569_s13 = sphi %s1605_s13, %s1952_s13   ;;  %s1565_s12 = sphi %s1603_s12, %s1951_s12   ;;  %s1561_s11 = sphi %s1601_s11, %s1950_s11   ;;  %s1557_s10 = sphi %s1599_s10, %s1949_s10   ;;  %s1553_s9 = sphi %s1597_s9, %s1948_s9  }
   0x8   : > { %p53_p0 = scmp.ne.s32.totalorder %s1557_s10, %s1553_s9  ;;  %p1631_p1 = scmp.eq.s32.totalorder %s1113_s15, 0 }
   0x9   : > { %p1635_p2 = scmp.eq.s32.totalorder %s1113_s15, 1  ;;  %p106_p3 = scmp.eq.s32.totalorder %s1114_s16, 1 }
   0xa   : > { %s1933_s17 = scalar_select %p1631_p1, 1, 0 }
   0xb   : > { %s1934_s18 = scalar_select %p1635_p2, 1, 0 }
   0xc   : > { %p1641_p4 = por %p1631_p1, %p53_p0  ;;  %p1115_p5 = scmp.ge.s32.totalorder %s1573_s14, 1 }
   0xd   : > { %p1646_p6 = por %p106_p3, %p53_p0  ;;  %p113_p7 = scmp.lt.s32.totalorder %s1573_s14, 3 }
   0xe   : > { %s1935_s19 = scalar_select %p1641_p4, 1, 0 }
   0xf   : > { %s1936_s20 = scalar_select %p1646_p6, 1, 0 }
  0x10   : > { %p1651_p8 = pnand %p1115_p5, %p113_p7  ;;  %s1575_s22 = smov [#allocation5]  }
  0x11   : > { %s125_s23 = sshll.u32 %s1575_s22, 4  ;;  %s31_s25 = sadd.s32 1, %s1569_s13  ;;  %s126_s23 = int_to_ptr.vmem [resolvable:$true] %s125_s23 }
  0x12   : > { %s1937_s21 = scalar_select %p1651_p8, 1, 0 }
  0x13   : > { %p1360_p9 = pneg %p1651_p8  ;;  %s1429_s28 = scalar_lea.hbm %s1927_s1, 256 }
  0x14   : > { %p1430_p12 = scmp.ne.s32.totalorder %s1927_s1, %s1429_s28  ;;  %p1436_p5 = scmp.lt.u32.totalorder %s1429_s28, %s1927_s1 }
  0x15   : > { %p1660_p11 = pnand %p1360_p9, %p1631_p1 }
  0x17   : > { %p1431_p13 = pneg %p1660_p11 }
  0x19   : > { %p1432_p0 = pnand %p1431_p13, %p1430_p12 }
  0x1b   : > { %p1433_p3 = pneg %p1432_p0 }
  0x1d   : > { %p1438_p7 = pnand %p1436_p5, %p1433_p3 }
  0x1f   : > { %1441 = shalt.err (!%p1438_p7)
}
  0x20   : > { %s1442_s5 = scalar_lea.vmem %s126_s23, 256  ;;  %p1450_p1 = scmp.lt.s32.totalorder %s126_s23, %s126_s23 }
  0x21   : > { %p1443_p9 = scmp.ne.s32.totalorder %s126_s23, %s1442_s5  ;;  %p1451_p4 = scmp.lt.s32.totalorder %s1442_s5, %s1442_s5 }
  0x23   : > { %p1445_p10 = pnand %p1443_p9, %p1431_p13  ;;  %p1452_p8 = por %p1451_p4, %p1450_p1 }
  0x25   : > { %p1446_p6 = pneg %p1445_p10 }
  0x27   : > { %p1453_p2 = pnand %p1452_p8, %p1446_p6 }
  0x29   : > { %1456 = shalt.err (!%p1453_p2)
}
  0x2a   : > { %s1576_s6 = smov 128   ;;  %s1577_s7 = smov 8  }
  0x2b   : > { %1363 = dma.hbm_to_vmem [thread:$0]  (!%p1660_p11), %s1927_s1, 256, %s126_s23, [#allocation6], %s1576_s6, %s1576_s6, %s1577_s7  }
  0x2c   : > { %p33_p1 = scmp.ge.s32.totalorder %s31_s25, 2  ;;  %s40_s16 = sadd.s32 1, %s1561_s11 }
  0x2d   : > { %p47_p2 = scmp.ne.s32.totalorder %s1561_s11, %s1557_s10  ;;  %p48_p4 = scmp.eq.s32.totalorder %s1573_s14, 0 }
  0x2e   : > { %s1954_s25 = smov (%p33_p1, %s31_s25), 0  ;;  %p1940_p8 = scmp.ne.s32.totalorder %s1934_s18, 0 }
  0x2f   : > { %p1690_p6 = por %p48_p4, %p47_p2  ;;  %s35_s26 = ssub.s32 %s1569_s13, %s1954_s25 }
  0x30   : > { %p1696_p10 = por %p1940_p8, %p47_p2  ;;  %p1373_p12 = scmp.lt.s32.totalorder %s1573_s14, 2 }
  0x31   : > { %p38_p11 = scmp.eq.s32.totalorder %s35_s26, 0  ;;  %s139_s23 = sand.u32 1, %s1561_s11  }
  0x32   : > { %s1118_s27 = sshll.u32 %s139_s23, 6  ;;  %s1130_s29 = sshll.u32 %s1569_s13, 10 }
  0x33   : > { %s1705_s28 = scalar_select %p38_p11, %s1561_s11, %s40_s16  }
  0x34   : > { %s1711_s4 = scalar_lea.hbm %s1926_s0, %s1130_s29  ;;  %s143_s18 = scalar_lea.vmem [#allocation2], %s1118_s27 }
  0x35   : > { %s152_s5 = sshll.u32 %s143_s18, 4  ;;  %p1717_p13 = pnand %p1373_p12, %p1690_p6  ;;  %s1713_s5 = int_to_ptr.vmem [resolvable:$true] %s152_s5 }
  0x36   : > { %s1721_s15 = scalar_lea.sflag [#allocation3], %s139_s23  ;;  %s1457_s16 = scalar_lea.hbm %s1711_s4, 1024 }
  0x37   : > { %p1458_p0 = scmp.ne.s32.totalorder %s1711_s4, %s1457_s16  ;;  %p1459_p3 = pneg %p1717_p13 }
  0x38   : > { %s1462_s22 = scalar_lea.hbm %s1926_s0, 2048  ;;  %p1463_p9 = scmp.lt.u32.totalorder %s1711_s4, %s1926_s0 }
  0x39   : > { %p1460_p5 = pnand %p1459_p3, %p1458_p0  ;;  %p1464_p1 = scmp.lt.u32.totalorder %s1462_s22, %s1457_s16 }
  0x3a   : > { %p1466_p4 = scmp.lt.u32.totalorder %s1457_s16, %s1711_s4 }
  0x3b   : > { %p1461_p7 = pneg %p1460_p5  ;;  %p1465_p2 = por %p1464_p1, %p1463_p9 }
  0x3d   : > { %p1467_p6 = por %p1466_p4, %p1465_p2 }
  0x3f   : > { %p1468_p8 = pnand %p1467_p6, %p1461_p7 }
  0x41   : > { %1471 = shalt.err (!%p1468_p8)
}
  0x42   : > { %s1472_s23 = scalar_lea.vmem %s1713_s5, 1024  ;;  %s1578_s3 = smov [#allocation2]  }
  0x43   : > { %p1473_p12 = scmp.ne.s32.totalorder %s1713_s5, %s1472_s23  ;;  %s1477_s18 = sshll.u32 %s1578_s3, 4  ;;  %s1478_s18 = int_to_ptr.vmem [resolvable:$false] %s1477_s18 }
  0x44   : > { %s1479_s26 = scalar_lea.vmem %s1478_s18, 2048  ;;  %p1480_p5 = scmp.lt.s32.totalorder %s1713_s5, %s1478_s18 }
  0x45   : > { %p1475_p11 = pnand %p1473_p12, %p1459_p3  ;;  %p1481_p9 = scmp.lt.s32.totalorder %s1479_s26, %s1472_s23 }
  0x47   : > { %p1476_p0 = pneg %p1475_p11  ;;  %p1482_p1 = por %p1481_p9, %p1480_p5 }
  0x49   : > { %p1483_p2 = pnand %p1482_p1, %p1476_p0 }
  0x4b   : > { %1486 = shalt.err (!%p1483_p2)
}
  0x4c   : > { %1367 = dma.hbm_to_vmem [thread:$0]  (!%p1717_p13), %s1711_s4, 1024, %s1713_s5, %s1721_s15, %s1576_s6, %s1576_s6, %s1577_s7  }
  0x4d   : > { %p1943_p3 = scmp.ne.s32.totalorder %s1937_s21, 0 }
  0x4e   : > { %s1755_s16 = sand.u32 (!%p1943_p3), 1, %s1557_s10   ;;  %p1944_p7 = scmp.ne.s32.totalorder (!%p1943_p3), %s1935_s19, 0 }
  0x4f   : > { %164 = sbr.rel (%p1943_p3) target bundleno = 378 (0x17a), region = 28  ;;  %s1122_s27 = sshll.u32 (!%p1943_p3), %s1755_s16, 6 }
  0x50   : > { %s167_s22 = scalar_lea.sflag (!%p1943_p3), [#allocation3], %s1755_s16  ;;  %s1761_s8 = scalar_lea.vmem (!%p1943_p3), [#allocation2], %s1122_s27 }
  0x56   : > { %1540 = dma.done.wait (%p1944_p7), %s167_s22, 1024  }
  0x57   : > { %1542 = vsyncadd (%p1944_p7), %s167_s22, 4294966272  ;;  %p1945_p13 = scmp.ne.s32.totalorder %s1933_s17, 0 }
  0x59   : > { %1544 = dma.done.wait (%p1945_p13), [#allocation6], 256  }
  0x5a   : > { %1546 = vsyncadd (%p1945_p13), [#allocation6], 4294967040  ;;  %vm207_vm0 = vcmask 130048   ;;  %v197_v0 = vld [vmem:[#allocation5] sm:$0xff]  ;;  %v198_v1 = vld [vmem:[#allocation5 + $0x8] sm:$0xff]  ;;  %s194_s17 = scalar_lea.vmem [#allocation7], %s1122_s27 }
  0x5b   : > { %v199_v2 = vld [vmem:[%s1761_s8] sm:$0xff]  ;;  %v233_v3 = vand.u32 4294901760, %v197_v0  ;;  %v236_v4 = vand.u32 4294901760, %v198_v1  ;;  %v200_v6 = vld [vmem:[%s1761_s8 + $0x8] sm:$0xff]  ;;  %v201_v7 = vld [vmem:[%s1761_s8 + $0x10] sm:$0xff]  ;;  %s1131_s19 = sshll.u32 %s1565_s12, 10 }
  0x5c   : > { %v209_v5 = vsel %vm207_vm0, %v199_v2, 0  ;;  %v202_v8 = vld [vmem:[%s1761_s8 + $0x18] sm:$0xff]  ;;  %v212_v10 = vsel %vm207_vm0, %v200_v6, 0  ;;  %v215_v11 = vsel %vm207_vm0, %v201_v7, 0  ;;  %v203_v13 = vld [vmem:[%s1761_s8 + $0x20] sm:$0xff]  ;;  %v204_v18 = vld [vmem:[%s1761_s8 + $0x28] sm:$0xff]  ;;  %s1873_s4 = scalar_lea.hbm %s1928_s2, %s1131_s19 }
  0x5d   : > { %v1776_v9 = vand.u32 4294901760, %v209_v5  ;;  %v218_v12 = vsel %vm207_vm0, %v202_v8, 0  ;;  %v1782_v14 = vpack.c.bf16 %v236_v4, %v233_v3  ;;  %v1784_v15 = vand.u32 4294901760, %v212_v10  ;;  %v205_v39 = vld [vmem:[%s1761_s8 + $0x30] sm:$0xff]  ;;  %v206_v48 = vld [vmem:[%s1761_s8 + $0x38] sm:$0xff]  ;;  %s1016_s21 = sshll.u32 %s194_s17, 4  ;;  %s1875_s21 = int_to_ptr.vmem [resolvable:$true] %s1016_s21 }
  0x5e   : > { %v1786_v16 = vand.u32 4294901760, %v215_v11  ;;  %v381_v17 = vsub.f32 %v197_v0, %v233_v3  ;;  %v388_v20 = vsub.f32 %v198_v1, %v236_v4  ;;  %v1792_v21 = vand.u32 4294901760, %v218_v12  ;;  %s1001_s12 = scalar_lea.sflag [#allocation4], %s1755_s16  ;;  %s1487_s5 = scalar_lea.vmem %s1875_s21, 1024 }
  0x5f   : > { %v1790_v19 = vsub.f32 %v209_v5, %v1776_v9  ;;  %v221_v22 = vsel %vm207_vm0, %v203_v13, 0  ;;  %1301 = vmatprep.subr.bf16.mxu0 %v1782_v14  ;;  %1289 = vmatprep.subr.bf16.mxu1 %v1782_v14  ;;  %v1798_v23 = vsub.f32 %v212_v10, %v1784_v15  ;;  %v224_v30 = vsel %vm207_vm0, %v204_v18, 0  ;;  %p1488_p4 = scmp.ne.s32.totalorder %s1875_s21, %s1487_s5  ;;  %s1579_s15 = smov [#allocation7]  }
  0x60   : > { %v1801_v24 = vsub.f32 %v215_v11, %v1786_v16  ;;  %v382_v25 = vand.u32 4294901760, %v381_v17  ;;  %v1803_v26 = vand.u32 4294901760, %v221_v22  ;;  %1303 = vmatpush3.bf16.msra.mxu0 %v1782_v14  ;;  %1291 = vmatpush3.bf16.msra.mxu1 %v1782_v14  ;;  %v389_v28 = vand.u32 4294901760, %v388_v20  ;;  %s1491_s29 = sshll.u32 %s1579_s15, 4  ;;  %s1492_s29 = int_to_ptr.vmem [resolvable:$false] %s1491_s29 }
  0x61   : > { %v301_v27 = vand.u32 4294901760, %v1790_v19  ;;  %v1809_v29 = vsub.f32 %v218_v12, %v1792_v21  ;;  %v311_v31 = vand.u32 4294901760, %v1798_v23  ;;  %v1824_v47 = vand.u32 4294901760, %v224_v30  ;;  %p1489_p6 = pnand %p1488_p4, %p1696_p10  ;;  %s1493_s30 = scalar_lea.vmem %s1492_s29, 2048 }
  0x62   : > { %v321_v32 = vand.u32 4294901760, %v1801_v24  ;;  %v383_v33 = vsub.f32 %v381_v17, %v382_v25  ;;  %v1815_v34 = vsub.f32 %v221_v22, %v1803_v26  ;;  %v390_v36 = vsub.f32 %v388_v20, %v389_v28  ;;  %p1494_p12 = scmp.lt.s32.totalorder %s1875_s21, %s1492_s29  ;;  %p1495_p11 = scmp.lt.s32.totalorder %s1493_s30, %s1487_s5 }
  0x63   : > { %1244 = vmatprep.mubr.f32.mxu0 %v301_v27  ;;  %v302_v35 = vsub.f32 %v1790_v19, %v301_v27  ;;  %v331_v37 = vand.u32 4294901760, %v1809_v29  ;;  %v1304_v38 = vpack.c.bf16 %v389_v28, %v382_v25  ;;  %v312_v40 = vsub.f32 %v1798_v23, %v311_v31  ;;  %p1490_p8 = pneg %p1489_p6 }
  0x64   : > { %1245 = vmatmul.mubr.f32.vlgmr.msra.gmra.mrb[0].mxu0 %v311_v31  ;;  %v384_v41 = vand.u32 4294901760, %v383_v33  ;;  %v322_v42 = vsub.f32 %v1801_v24, %v321_v32  ;;  %v341_v43 = vand.u32 4294901760, %v1815_v34  ;;  %v391_v45 = vand.u32 4294901760, %v390_v36  ;;  %p1496_p0 = por %p1495_p11, %p1494_p12 }
  0x65   : > { %v303_v44 = vand.u32 4294901760, %v302_v35  ;;  %1247 = vmatprep.mubr.f32.mxu0 %v321_v32  ;;  %1305 = vmatprep.subr.bf16.mxu0 %v1304_v38  ;;  %v332_v46 = vsub.f32 %v1809_v29, %v331_v37  ;;  %v313_v49 = vand.u32 4294901760, %v312_v40  ;;  %v227_v52 = vsel %vm207_vm0, %v205_v39, 0 }
  0x66   : > { %1307 = vmatpush3.bf16.msra.mxu0 %v1304_v38  ;;  %v323_v50 = vand.u32 4294901760, %v322_v42  ;;  %v342_v51 = vsub.f32 %v1815_v34, %v341_v43  ;;  %v1292_v53 = vpack.c.bf16 %v391_v45, %v384_v41  ;;  %v1830_v54 = vsub.f32 %v224_v30, %v1824_v47  ;;  %p1497_p5 = pnand %p1496_p0, %p1490_p8 }
  0x67   : > { %1196 = vmatprep.mubr.f32.mxu1 %v303_v44  ;;  %v359_v55 = vand.u32 4294901760, %v227_v52  ;;  %1309 = vmatprep.subr.bf16.mxu0 %v1782_v14  ;;  %v333_v56 = vand.u32 4294901760, %v332_v46  ;;  %v230_v57 = vsel %vm207_vm0, %v206_v48, 0  ;;  %v1296_v58 = vpack.c.bf16 %v388_v20, %v381_v17 }
  0x68   : > { %1197 = vmatmul.mubr.f32.vlgmr.msra.gmra.mrb[0].mxu1 %v313_v49  ;;  %1248 = vmatmul.mubr.f32.gmra.mrb[2].mxu0 %v331_v37  ;;  %v351_v59 = vand.u32 4294901760, %v1830_v54  ;;  %v343_v60 = vand.u32 4294901760, %v342_v51  ;;  %v369_v62 = vand.u32 4294901760, %v230_v57 }
  0x69   : > { %1293 = vmatprep.subr.bf16.mxu1 %v1292_v53  ;;  %1199 = vmatprep.mubr.f32.mxu1 %v323_v50  ;;  %v360_v61 = vsub.f32 %v227_v52, %v359_v55 }
  0x6a   : > { %1295 = vmatpush3.bf16.msra.mxu1 %v1292_v53  ;;  %1250 = vmatprep.mubr.f32.mxu0 %v341_v43  ;;  %v352_v0 = vsub.f32 %v1830_v54, %v351_v59  ;;  %v370_v1 = vsub.f32 %v230_v57, %v369_v62 }
  0x6b   : > { %v361_v63 = vand.u32 4294901760, %v360_v61  ;;  %1297 = vmatprep.subr.bf16.mxu1 %v1296_v58 }
  0x6c   : > { %1200 = vmatmul.mubr.f32.gmra.mrb[2].mxu1 %v333_v56  ;;  %1251 = vmatmul.mubr.f32.gmra.mrb[4].mxu0 %v351_v59  ;;  %v353_v2 = vand.u32 4294901760, %v352_v0  ;;  %v371_v3 = vand.u32 4294901760, %v370_v1 }
  0x6d   : > { %1202 = vmatprep.mubr.f32.mxu1 %v343_v60  ;;  %1253 = vmatprep.mubr.f32.mxu0 %v361_v63  ;;  %v362_v4 = vsub.f32 %v360_v61, %v361_v63 }
  0x6e   : > { %v372_v6 = vsub.f32 %v370_v1, %v371_v3 }
  0x6f   : > { %v363_v5 = vand.u32 4294901760, %v362_v4 }
  0x70   : > { %1203 = vmatmul.mubr.f32.gmra.mrb[4].mxu1 %v353_v2  ;;  %1254 = vmatmul.mubr.f32.gmra.mrb[6].mxu0 %v371_v3  ;;  %v373_v7 = vand.u32 4294901760, %v372_v6 }
  0x71   : > { %1205 = vmatprep.mubr.f32.mxu1 %v363_v5  ;;  %1260 = vmatprep.mubr.f32.mxu0 %v1776_v9 }
  0x74   : > { %1206 = vmatmul.mubr.f32.gmra.mrb[6].mxu1 %v373_v7  ;;  %1261 = vmatmul.mubr.f32.vlgmr.msra.gmra.mrb[0].mxu0 %v1784_v15 }
  0x75   : > { %1212 = vmatprep.mubr.f32.mxu1 %v1776_v9  ;;  %1263 = vmatprep.mubr.f32.mxu0 %v1786_v16 }
  0x76   : > { %1311 = vmatpush3.bf16.msra.mxu0 %v1782_v14 }
  0x78   : > { %1213 = vmatmul.mubr.f32.vlgmr.msra.gmra.mrb[0].mxu1 %v1784_v15  ;;  %1264 = vmatmul.mubr.f32.gmra.mrb[2].mxu0 %v1792_v21 }
  0x79   : > { %1299 = vmatpush3.bf16.msra.mxu1 %v1296_v58  ;;  %1215 = vmatprep.mubr.f32.mxu1 %v1786_v16 }
  0x7a   : > { %1266 = vmatprep.mubr.f32.mxu0 %v1803_v26 }
  0x7c   : > { %1216 = vmatmul.mubr.f32.gmra.mrb[2].mxu1 %v1792_v21  ;;  %1267 = vmatmul.mubr.f32.gmra.mrb[4].mxu0 %v1824_v47 }
  0x7d   : > { %1218 = vmatprep.mubr.f32.mxu1 %v1803_v26  ;;  %1269 = vmatprep.mubr.f32.mxu0 %v359_v55 }
  0x80   : > { %1219 = vmatmul.mubr.f32.gmra.mrb[4].mxu1 %v1824_v47  ;;  %1270 = vmatmul.mubr.f32.gmra.mrb[6].mxu0 %v369_v62 }
  0x81   : > { %1221 = vmatprep.mubr.f32.mxu1 %v359_v55  ;;  %1276 = vmatprep.mubr.f32.mxu0 %v1776_v9 }
  0x84   : > { %1222 = vmatmul.mubr.f32.gmra.mrb[6].mxu1 %v369_v62  ;;  %1277 = vmatmul.mubr.f32.vlgmr.msra.gmra.mrb[0].mxu0 %v1784_v15 }
  0x85   : > { %1228 = vmatprep.mubr.f32.mxu1 %v1790_v19  ;;  %1279 = vmatprep.mubr.f32.mxu0 %v1786_v16 }
  0x88   : > { %1229 = vmatmul.mubr.f32.vlgmr.msra.gmra.mrb[0].mxu1 %v1798_v23  ;;  %1280 = vmatmul.mubr.f32.gmra.mrb[2].mxu0 %v1792_v21 }
  0x89   : > { %1231 = vmatprep.mubr.f32.mxu1 %v1801_v24  ;;  %1282 = vmatprep.mubr.f32.mxu0 %v1803_v26 }
  0x8c   : > { %1232 = vmatmul.mubr.f32.gmra.mrb[2].mxu1 %v1809_v29  ;;  %1283 = vmatmul.mubr.f32.gmra.mrb[4].mxu0 %v1824_v47 }
  0x8d   : > { %1234 = vmatprep.mubr.f32.mxu1 %v1815_v34  ;;  %1285 = vmatprep.mubr.f32.mxu0 %v359_v55 }
  0x90   : > { %1235 = vmatmul.mubr.f32.gmra.mrb[4].mxu1 %v1830_v54  ;;  %1286 = vmatmul.mubr.f32.gmra.mrb[6].mxu0 %v369_v62 }
  0x91   : > { %1237 = vmatprep.mubr.f32.mxu1 %v360_v61 }
  0x94   : > { %1238 = vmatmul.mubr.f32.gmra.mrb[6].mxu1 %v370_v1 }
 0x157   : > { %v1278_v8 = vpop.f32.mrb[0].mxu0 }
 0x158   : > { %v946_v9 = vpop.f32.mrb[1].mxu0 }
 0x15b   : > { %v1230_v10 = vpop.f32.mrb[0].mxu1  ;;  %v1281_v11 = vpop.f32.mrb[2].mxu0 }
 0x15c   : > { %v1312_v12 = vadd.f32 %v1278_v8, %v1230_v10  ;;  %v574_v13 = vpop.f32.mrb[1].mxu1  ;;  %v958_v14 = vpop.f32.mrb[3].mxu0 }
 0x15d   : > { %v1313_v15 = vadd.f32 %v946_v9, %v574_v13 }
 0x15e   : > { %993 = vst.msk [vmem:[%s194_s17 + $0x8] sm:$0xff] %vm207_vm0, %v1312_v12 }
 0x15f   : > { %992 = vst.msk [vmem:[%s194_s17] sm:$0xff] %vm207_vm0, %v1313_v15  ;;  %v1233_v16 = vpop.f32.mrb[2].mxu1  ;;  %v1284_v17 = vpop.f32.mrb[4].mxu0 }
 0x160   : > { %v1314_v18 = vadd.f32 %v1281_v11, %v1233_v16  ;;  %v588_v19 = vpop.f32.mrb[3].mxu1  ;;  %v970_v20 = vpop.f32.mrb[5].mxu0 }
 0x161   : > { %v1315_v21 = vadd.f32 %v958_v14, %v588_v19 }
 0x162   : > { %995 = vst.msk [vmem:[%s194_s17 + $0x18] sm:$0xff] %vm207_vm0, %v1314_v18 }
 0x163   : > { %994 = vst.msk [vmem:[%s194_s17 + $0x10] sm:$0xff] %vm207_vm0, %v1315_v21  ;;  %v1236_v22 = vpop.f32.mrb[4].mxu1  ;;  %v1287_v23 = vpop.f32.mrb[6].mxu0 }
 0x164   : > { %v1316_v24 = vadd.f32 %v1284_v17, %v1236_v22  ;;  %v602_v25 = vpop.f32.mrb[5].mxu1  ;;  %v982_v26 = vpop.f32.mrb[7].mxu0 }
 0x165   : > { %v1317_v27 = vadd.f32 %v970_v20, %v602_v25 }
 0x166   : > { %997 = vst.msk [vmem:[%s194_s17 + $0x28] sm:$0xff] %vm207_vm0, %v1316_v24 }
 0x167   : > { %996 = vst.msk [vmem:[%s194_s17 + $0x20] sm:$0xff] %vm207_vm0, %v1317_v27  ;;  %v1239_v28 = vpop.f32.mrb[6].mxu1 }
 0x168   : > { %v1318_v29 = vadd.f32 %v1287_v23, %v1239_v28  ;;  %v616_v30 = vpop.f32.mrb[7].mxu1 }
 0x169   : > { %v1319_v31 = vadd.f32 %v982_v26, %v616_v30 }
 0x16a   : > { %999 = vst.msk [vmem:[%s194_s17 + $0x38] sm:$0xff] %vm207_vm0, %v1318_v29 }
 0x16b   : > { %998 = vst.msk [vmem:[%s194_s17 + $0x30] sm:$0xff] %vm207_vm0, %v1319_v31 }
 0x16c   : > { %1500 = shalt.err (!%p1497_p5)
}
 0x16d   : > { %s1501_s23 = scalar_lea.hbm %s1873_s4, 1024  ;;  %s1505_s26 = scalar_lea.hbm %s1928_s2, 2048 }
 0x16e   : > { %p1502_p9 = scmp.ne.s32.totalorder %s1873_s4, %s1501_s23  ;;  %p1506_p3 = scmp.lt.u32.totalorder %s1873_s4, %s1928_s2 }
 0x16f   : > { %p1507_p7 = scmp.lt.u32.totalorder %s1505_s26, %s1501_s23  ;;  %p1509_p4 = scmp.lt.u32.totalorder %s1501_s23, %s1873_s4 }
 0x170   : > { %p1503_p1 = pnand %p1502_p9, %p1696_p10 }
 0x171   : > { %p1508_p13 = por %p1507_p7, %p1506_p3 }
 0x172   : > { %p1504_p2 = pneg %p1503_p1 }
 0x173   : > { %p1510_p6 = por %p1509_p4, %p1508_p13 }
 0x175   : > { %p1511_p8 = pnand %p1510_p6, %p1504_p2 }
 0x177   : > { %1514 = shalt.err (!%p1511_p8)
}
 0x178   : > { %s1580_s8 = smov 128   ;;  %s1581_s17 = smov 8  }
 0x179   : > { %1358 = dma.vmem_to_hbm [thread:$0]  (%p1696_p10), %s1875_s21, 1024, %s1873_s4, %s1001_s12, %s1580_s8, %s1580_s8, %s1581_s17  }
 0x17a PF: > { %s1031_s19 = sand.u32 1, %s1553_s9   ;;  %p1946_p12 = scmp.ne.s32.totalorder %s1936_s20, 0 }
 0x17b   : > { %p1947_p11 = scmp.ge.s32.totalorder %s1573_s14, 2  ;;  %s1032_s6 = scalar_lea.sflag [#allocation4], %s1031_s19 }
 0x17d   : > { %p1369_p0 = pnand %p1947_p11, %p1946_p12 }
 0x17f   : > { %1548 = dma.done.wait (!%p1369_p0), %s1032_s6, 1024  }
 0x180   : > { %1550 = vsyncadd (!%p1369_p0), %s1032_s6, 4294966272  ;;  %s19_s14 = sadd.s32 1, %s1573_s14   ;;  %s1948_s9 = smov %s1557_s10 }
 0x181   : > { %p16_p5 = scmp.ge.s32.totalorder %s19_s14, 4   ;;  %s1949_s10 = smov %s1561_s11 }
 0x182   : > { %s1950_s11 = smov %s1705_s28  ;;  %s1951_s12 = smov %s1569_s13 }
 0x183   : > { %s1952_s13 = smov %s1954_s25  ;;  %18 = sbr.rel (!%p16_p5) target bundleno = 7 (0x7), region = 77 }
 0x18a   :  { %1037 = vsyncpa [#allocation3], 1 }
 0x18b   :  { %1039 = vsyncpa [#allocation3 + $0x1], 1 }
 0x18c   :  { %1040 = vsyncpa [#allocation6], 1 }
 0x18d   :  { %1041 = vsyncpa [#allocation4], 1 }
 0x18e   :  { %1043 = vsyncpa [#allocation4 + $0x1], 1 }

</bundles_post_ra>
